<compile_context>
chip_gen: v7x
topology: tpu7x:2x2x1
jax: 0.10.0
libtpu: 0.0.40
codegen_flags: <defaults>
</compile_context>

<pallas_src>
import functools

import jax
import jax.numpy as jnp
import numpy as np
from jax.experimental import pallas as pl
from jax.experimental.pallas import tpu as pltpu

_VMEM_LIMIT = 32 * 1024 * 1024     # scoped VMEM budget: safe on v5e/v6e and v7x (64 MiB phys)
_STEP_BUDGET = 10 * 1024 * 1024    # per-grid-step streamed bytes (x2 for double buffering)


def _round_up(x, m):
    return ((x + m - 1) // m) * m


def _pick_tile_m(m, bytes_per_row, cap=8192):
    """Largest multiple of 128 lanes whose double-buffered streams fit the budget."""
    tm = _STEP_BUDGET // (2 * max(int(bytes_per_row), 1))
    tm = max(128, (tm // 128) * 128)
    tm = min(tm, cap)
    tm = min(tm, _round_up(m, 128))
    return int(tm)


# --------------------------------------------------------------------------- kernels
def _identity_kernel(xs_ref, w3_ref, o_ref, *, cin):
    """out = conv(x) + x for one M-tile.

    xs_ref: (R, TM) bf16 fused im2col (rows 0..cin-1 are x itself);
    w3_ref: (Cout, R) bf16 conv weight; o_ref: (Cout, TM) f32.
    """
    acc = jnp.dot(w3_ref[...], xs_ref[...], preferred_element_type=jnp.float32)
    res = xs_ref[pl.ds(0, cin), :].astype(jnp.float32)     # residual = anchor tap
    o_ref[...] = acc + res


def _downsample_main_kernel(xs_ref, w3_ref, wd_ref, scale_ref, shift_ref, o_ref,
                            *, cin):
    """out = conv(x) + scale * conv1x1(x) + shift for one M-tile (BN pre-folded)."""
    acc = jnp.dot(w3_ref[...], xs_ref[...], preferred_element_type=jnp.float32)
    xres = xs_ref[pl.ds(0, cin), :]                         # (Cin, TM) bf16, anchor tap
    d = jnp.dot(wd_ref[...], xres, preferred_element_type=jnp.float32)
    o_ref[...] = acc + d * scale_ref[...] + shift_ref[...]


def _bn_stats_kernel(xc_ref, wd_ref, mean_ref, m2_ref, *, tile_m, total_m):
    """Accumulate BatchNorm mean / centered sum-of-squares of conv1x1(x) over M-tiles.

    Chan/Welford merge across grid steps (grid axis is "arbitrary"); the last,
    partial tile is masked by global column index.
    """
    i = pl.program_id(0)
    d = jnp.dot(wd_ref[...], xc_ref[...], preferred_element_type=jnp.float32)  # (Cout, TM)
    col = jax.lax.broadcasted_iota(jnp.int32, d.shape, 1) + i * tile_m
    valid = col < total_m
    d = jnp.where(valid, d, 0.0)
    n_t = jnp.minimum(total_m - i * tile_m, tile_m).astype(jnp.float32)
    mean_t = jnp.sum(d, axis=1, keepdims=True) / n_t                           # (Cout, 1)
    diff = jnp.where(valid, d - mean_t, 0.0)
    m2_t = jnp.sum(diff * diff, axis=1, keepdims=True)                         # (Cout, 1)

    @pl.when(i == 0)
    def _():
        mean_ref[...] = mean_t
        m2_ref[...] = m2_t

    @pl.when(i > 0)
    def _():
        n_prev = (i * tile_m).astype(jnp.float32)   # all earlier tiles were full
        n_new = n_prev + n_t
        delta = mean_t - mean_ref[...]
        mean_ref[...] = mean_ref[...] + delta * (n_t / n_new)
        m2_ref[...] = m2_ref[...] + m2_t + delta * delta * (n_prev * n_t / n_new)


# --------------------------------------------------------------------------- wrapper
def res_conv_forward(x_nchw, w_conv, w_down, bn_gamma, bn_beta,
                     *, stride=1, padding=1, eps=1e-5, tile_m=None):
    """Forward of ResConv. x_nchw: (N,Cin,H,W) f32; returns (N,Cout,Hout,Wout) f32."""
    N, Cin, H, W = x_nchw.shape
    Cout, _, K, _ = w_conv.shape
    Hout = (H + 2 * padding - K) // stride + 1
    Wout = (W + 2 * padding - K) // stride + 1
    M = N * Hout * Wout
    KK = K * K
    need_downsample = (Cin != Cout) or (Hout != H) or (Wout != W)

    # ---- wrapper glue (plain XLA): channel-major layout, pad, im2col taps ----
    xT = jnp.transpose(x_nchw, (1, 0, 2, 3)).astype(jnp.float32)      # (Cin, N, H, W)
    xp = jnp.pad(xT, ((0, 0), (0, 0), (padding, padding), (padding, padding)))
    taps = []
    for kh in range(K):
        for kw in range(K):
            sl = xp[:, :, kh: kh + stride * (Hout - 1) + 1: stride,
                          kw: kw + stride * (Wout - 1) + 1: stride]
            taps.append(sl.reshape(Cin, M))                           # (Cin, M) each
    # conv weight (Cout, Cin, K, K) -> (Cout, K*K*Cin) matching tap/channel row order
    w3 = jnp.transpose(w_conv.astype(jnp.float32), (0, 2, 3, 1)).reshape(Cout, KK * Cin)

    # The residual / 1x1-downsample input equals im2col tap (padding, padding)
    # (and equals x exactly for the identity path, where stride == 1 is forced),
    # so it is not streamed separately: it is placed as the FIRST Cin rows of the
    # fused im2col block and sliced in-kernel.
    anchor = padding * K + padding if 0 <= padding < K else None
    if (not need_downsample) and stride != 1:
        anchor = None
    if anchor is not None:
        order = [anchor] + [t for t in range(KK) if t != anchor]
        xs_rows = [taps[t] for t in order]
        w3_r = w3.reshape(Cout, KK, Cin)[:, order, :].reshape(Cout, KK * Cin)
        xc_t = taps[anchor]                        # only needed for the BN-stats pass
    else:
        # TODO(synk): rare configs (padding >= K) stream the residual input separately.
        if need_downsample:
            xc4 = xT[:, :, ::stride, ::stride]
            if xc4.shape[2] != Hout or xc4.shape[3] != Wout:
                raise ValueError("downsample branch spatial shape mismatch")
            xc_t = xc4.reshape(Cin, M)
        else:
            xc_t = xT.reshape(Cin, M)
        xs_rows = [xc_t] + taps
        w3_r = jnp.concatenate([jnp.zeros((Cout, Cin), jnp.float32), w3], axis=1)

    xs_bf = jnp.concatenate(xs_rows, axis=0).astype(jnp.bfloat16)     # (R, M)
    R = xs_bf.shape[0]
    w3_bf = w3_r.astype(jnp.bfloat16)                                 # (Cout, R)

    # M-tile size: biggest 128-lane multiple whose double-buffered streams fit VMEM.
    if tile_m is None:
        TM = _pick_tile_m(M, R * 2 + Cout * 4)
    else:
        TM = min(max(128, (int(tile_m) // 128) * 128), _round_up(M, 128))
    num_tiles = -(-M // TM)

    parallel_params = pltpu.CompilerParams(dimension_semantics=("parallel",),
                                           vmem_limit_bytes=_VMEM_LIMIT)

    if not need_downsample:
        cost = pl.CostEstimate(
            flops=2 * M * R * Cout, transcendentals=0,
            bytes_accessed=int(xs_bf.size) * 2 + int(w3_bf.size) * 2 + M * Cout * 4)
        out_t = pl.pallas_call(
            functools.partial(_identity_kernel, cin=Cin),
            out_shape=jax.ShapeDtypeStruct((Cout, M), jnp.float32),
            grid=(num_tiles,),
            in_specs=[pl.BlockSpec((R, TM), lambda i: (0, i)),
                      pl.BlockSpec((Cout, R), lambda i: (0, 0))],
            out_specs=pl.BlockSpec((Cout, TM), lambda i: (0, i)),
            compiler_params=parallel_params,
            cost_estimate=cost,
        )(xs_bf, w3_bf)
    else:
        xc_bf = xc_t.astype(jnp.bfloat16)                             # (Cin, M)
        wd_bf = w_down.astype(jnp.float32).reshape(Cout, Cin).astype(jnp.bfloat16)

        # Pass 1: global BatchNorm statistics (centered, Chan-merged across M-tiles).
        stats_cost = pl.CostEstimate(
            flops=2 * M * Cin * Cout, transcendentals=0,
            bytes_accessed=int(xc_bf.size) * 2 + int(wd_bf.size) * 2 + 2 * Cout * 4)
        mean, m2 = pl.pallas_call(
            functools.partial(_bn_stats_kernel, tile_m=TM, total_m=M),
            out_shape=(jax.ShapeDtypeStruct((Cout, 1), jnp.float32),
                       jax.ShapeDtypeStruct((Cout, 1), jnp.float32)),
            grid=(num_tiles,),
            in_specs=[pl.BlockSpec((Cin, TM), lambda i: (0, i)),
                      pl.BlockSpec((Cout, Cin), lambda i: (0, 0))],
            out_specs=(pl.BlockSpec((Cout, 1), lambda i: (0, 0)),
                       pl.BlockSpec((Cout, 1), lambda i: (0, 0))),
            compiler_params=pltpu.CompilerParams(
                dimension_semantics=("arbitrary",), vmem_limit_bytes=_VMEM_LIMIT),
            cost_estimate=stats_cost,
        )(xc_bf, wd_bf)

        var = m2 / float(M)                         # biased variance (training-mode BN)
        inv = jax.lax.rsqrt(var + eps)
        scale = bn_gamma.astype(jnp.float32).reshape(Cout, 1) * inv
        shift = bn_beta.astype(jnp.float32).reshape(Cout, 1) - mean * scale

        # Pass 2: fused conv + 1x1 downsample + BN affine + residual add.
        cost = pl.CostEstimate(
            flops=2 * M * R * Cout + 2 * M * Cin * Cout, transcendentals=0,
            bytes_accessed=(int(xs_bf.size) * 2 + int(w3_bf.size) * 2
                            + int(wd_bf.size) * 2 + M * Cout * 4))
        out_t = pl.pallas_call(
            functools.partial(_downsample_main_kernel, cin=Cin),
            out_shape=jax.ShapeDtypeStruct((Cout, M), jnp.float32),
            grid=(num_tiles,),
            in_specs=[pl.BlockSpec((R, TM), lambda i: (0, i)),
                      pl.BlockSpec((Cout, R), lambda i: (0, 0)),
                      pl.BlockSpec((Cout, Cin), lambda i: (0, 0)),
                      pl.BlockSpec((Cout, 1), lambda i: (0, 0)),
                      pl.BlockSpec((Cout, 1), lambda i: (0, 0))],
            out_specs=pl.BlockSpec((Cout, TM), lambda i: (0, i)),
            compiler_params=parallel_params,
            cost_estimate=cost,
        )(xs_bf, w3_bf, wd_bf, scale, shift)

    # wrapper glue: (Cout, M) -> NCHW
    return jnp.transpose(out_t.reshape(Cout, N, Hout, Wout), (1, 0, 2, 3))


# --------------------------------------------------------------------------- reference
def res_conv_reference(x, w_conv, w_down, gamma, beta,
                       *, stride=1, padding=1, eps=1e-5):
    """Pure-JAX f32 reference mirroring the PyTorch forward (training-mode BN)."""
    out = jax.lax.conv_general_dilated(
        x, w_conv, window_strides=(stride, stride),
        padding=((padding, padding), (padding, padding)),
        dimension_numbers=('NCHW', 'OIHW', 'NCHW'))
    if x.shape != out.shape:
        xd = jax.lax.conv_general_dilated(
            x, w_down, window_strides=(stride, stride), padding='VALID',
            dimension_numbers=('NCHW', 'OIHW', 'NCHW'))
        mean = jnp.mean(xd, axis=(0, 2, 3), keepdims=True)
        var = jnp.mean((xd - mean) ** 2, axis=(0, 2, 3), keepdims=True)
        x = ((xd - mean) * jax.lax.rsqrt(var + eps)
             * gamma.reshape(1, -1, 1, 1) + beta.reshape(1, -1, 1, 1))
    return out + x


if __name__ == "__main__":
    key = jax.random.PRNGKey(0)
    k1, k2, k3, k4, k5 = jax.random.split(key, 5)

    def run_case(N, Cin, Cout, H, W, stride, padding, tile_m):
        x = jax.random.normal(k1, (N, Cin, H, W), jnp.float32)
        w_conv = jax.random.normal(k2, (Cout, Cin, 3, 3), jnp.float32) * 0.1
        w_down = jax.random.normal(k3, (Cout, Cin, 1, 1), jnp.float32) * 0.1
        gamma = 0.5 + jax.random.uniform(k4, (Cout,), jnp.float32)
        beta = 0.1 * jax.random.normal(k5, (Cout,), jnp.float32)
        out = jax.block_until_ready(res_conv_forward(
            x, w_conv, w_down, gamma, beta,
            stride=stride, padding=padding, tile_m=tile_m))
        ref = res_conv_reference(x, w_conv, w_down, gamma, beta,
                                 stride=stride, padding=padding)
        np.testing.assert_allclose(np.asarray(out), np.asarray(ref),
                                   rtol=2e-2, atol=2e-2)

    # Case 1: identity residual path (Cin == Cout), multi-tile (M=512, TM=128).
    run_case(N=2, Cin=4, Cout=4, H=16, W=16, stride=1, padding=1, tile_m=128)
    # Case 2: downsample path (channel change), auto tile size (single tile).
    run_case(N=2, Cin=4, Cout=8, H=16, W=16, stride=1, padding=1, tile_m=None)
    # Case 3: downsample path with stride 2 and a partial last M-tile (M=162, TM=128).
    run_case(N=2, Cin=4, Cout=8, H=18, W=18, stride=2, padding=1, tile_m=128)

    print("KERNEL_OK")
</pallas_src>

<mosaic_0001>
module attributes {stable_mosaic.version = 11 : i64} {
  func.func @_identity_kernel(%arg0: i32, %arg1: memref<36x128xbf16, #tpu.memory_space<vmem>>, %arg2: memref<4x36xbf16, #tpu.memory_space<vmem>>, %arg3: memref<4x128xf32, #tpu.memory_space<vmem>>) attributes {dimension_semantics = [#tpu.dimension_semantics<parallel>], iteration_bounds = array<i64: 4>, scalar_prefetch = 0 : i64, scratch_operands = 0 : i64, tpu.core_type = #tpu.core_type<tc>, window_params = [{transform_indices = @transform_0, window_bounds = array<i64: 36, 128>}, {pipeline_mode = #tpu.pipeline_mode<synchronous>, transform_indices = @transform_1, window_bounds = array<i64: 4, 36>}, {transform_indices = @transform_2, window_bounds = array<i64: 4, 128>}]} {
    %c0 = arith.constant 0 : index
    %c0_0 = arith.constant 0 : index
    %0 = vector.load %arg2[%c0, %c0_0] : memref<4x36xbf16, #tpu.memory_space<vmem>>, vector<4x36xbf16>
    %c0_1 = arith.constant 0 : index
    %c0_2 = arith.constant 0 : index
    %1 = vector.load %arg1[%c0_1, %c0_2] : memref<36x128xbf16, #tpu.memory_space<vmem>>, vector<36x128xbf16>
    %cst = arith.constant dense<0.000000e+00> : vector<4x128xf32>
    %2 = tpu.matmul %0, %1, %cst {dimension_numbers = #tpu.dot_dimension_numbers<[1], [0], [0], [1], [0, 0, 1, 1], [], []>} : vector<4x36xbf16>, vector<36x128xbf16>, vector<4x128xf32> -> vector<4x128xf32>
    %c0_3 = arith.constant 0 : index
    %c0_4 = arith.constant 0 : index
    %3 = vector.load %arg1[%c0_3, %c0_4] : memref<36x128xbf16, #tpu.memory_space<vmem>>, vector<4x128xbf16>
    %4 = arith.extf %3 : vector<4x128xbf16> to vector<4x128xf32>
    %5 = arith.addf %2, %4 : vector<4x128xf32>
    %c0_5 = arith.constant 0 : index
    %c0_6 = arith.constant 0 : index
    %6 = vector.load %arg3[%c0_5, %c0_6] : memref<4x128xf32, #tpu.memory_space<vmem>>, vector<4x128xf32>
    tpu.vector_store %arg3[%c0_5, %c0_6], %5 {strides = array<i32>} : memref<4x128xf32, #tpu.memory_space<vmem>>, vector<4x128xf32>,
    return
  }
  func.func @transform_0(%arg0: i32) -> (i32, i32) {
    %c0_i32 = arith.constant 0 : i32
    %c0_i32_0 = arith.constant 0 : i32
    return %c0_i32, %arg0 : i32, i32
  }
  func.func @transform_1(%arg0: i32) -> (i32, i32) {
    %c0_i32 = arith.constant 0 : i32
    %c0_i32_0 = arith.constant 0 : i32
    %c0_i32_1 = arith.constant 0 : i32
    return %c0_i32, %c0_i32_0 : i32, i32
  }
  func.func @transform_2(%arg0: i32) -> (i32, i32) {
    %c0_i32 = arith.constant 0 : i32
    %c0_i32_0 = arith.constant 0 : i32
    return %c0_i32, %arg0 : i32, i32
  }
}

</mosaic_0001>

<bundles_post_ra>
// kernel: tpu_custom_call.1
= control target key start
LH: loop header
LB: loop body
LE: loop exit
PB: predicated region body
PF: predicated region fallthrough
CT: control target
= control target key end

     0   :  { %7 = vsyncpa [#allocation3], 0  ;;  %s680_s0 = inlined_call_operand.hbm [shape: bf16[36,512], index: 0, kind: input, shape index: {}]   ;;  %s681_s1 = inlined_call_operand.vmem [shape: bf16[4,36], index: 1, kind: input, shape index: {}]   ;;  %s682_s2 = inlined_call_operand.hbm [shape: f32[4,512], index: 2, kind: output, shape index: {}]  }
   0x1   :  { %9 = vsyncpa [#allocation3 + $0x1], 0 }
   0x2   :  { %10 = vsyncpa [#allocation4], 0 }
   0x3   :  { %12 = vsyncpa [#allocation4 + $0x1], 0  ;;  %s522_s9 = smov 0   ;;  %s524_s10 = smov 0  }
   0x4   :  { %s526_s11 = smov 0   ;;  %s528_s12 = smov 0  }
   0x5 LB: > { %s543_s13 = sadd.s32 4294967295, %s498_s12   ;;  %s318_s14 = sadd.s32 4294967294, %s498_s12   ;;  %s498_s12 = sphi %s528_s12, %s694_s12   ;;  %s494_s11 = sphi %s526_s11, %s693_s11   ;;  %s490_s10 = sphi %s524_s10, %s692_s10   ;;  %s486_s9 = sphi %s522_s9, %s691_s9  }
   0x6   : > { %s547_s15 = sadd.s32 1, %s498_s12   ;;  %s25_s16 = sadd.s32 1, %s494_s11 }
   0x7   : > { %s22_s17 = ssub.s32 %s498_s12, %s547_s15  ;;  %p32_p0 = scmp.ne.s32.totalorder %s494_s11, %s490_s10 }
   0x8   : > { %p23_p1 = scmp.eq.s32.totalorder %s22_s17, 0  ;;  %p33_p2 = scmp.eq.s32.totalorder %s498_s12, 0 }
   0x9   : > { %p38_p3 = scmp.ne.s32.totalorder %s490_s10, %s486_s9  ;;  %p39_p4 = scmp.eq.s32.totalorder %s543_s13, 0 }
   0xa   : > { %s559_s18 = scalar_select %p23_p1, %s494_s11, %s25_s16  }
   0xb   : > { %p34_p5 = por %p33_p2, %p32_p0  ;;  %p561_p6 = por %p39_p4, %p38_p3 }
   0xc   : > { %p83_p7 = scmp.eq.s32.totalorder %s543_s13, 3  ;;  %p89_p8 = scmp.eq.s32.totalorder %s318_s14, 3 }
   0xd   : > { %p360_p9 = scmp.lt.s32.totalorder %s498_s12, 4  ;;  %s112_s22 = sand.u32 1, %s494_s11  }
   0xe   : > { %p567_p10 = por %p83_p7, %p32_p0  ;;  %p571_p11 = por %p89_p8, %p38_p3 }
   0xf   : > { %s321_s23 = sshll.u32 %s498_s12, 6  ;;  %s346_s24 = smul.u32 20, %s112_s22 }
  0x10   : > { %s685_s20 = scalar_select %p567_p10, 1, 0 }
  0x11   : > { %s686_s21 = scalar_select %p571_p11, 1, 0 }
  0x12   : > { %s580_s27 = scalar_lea.hbm %s680_s0, %s321_s23  ;;  %p582_p12 = pnand %p360_p9, %p34_p5 }
  0x13   : > { %s116_s29 = scalar_lea.vmem [#allocation2], %s346_s24  ;;  %s589_s3 = scalar_lea.sflag [#allocation3], %s112_s22 }
  0x14   : > { %s122_s30 = sshll.u32 %s116_s29, 4  ;;  %s402_s4 = scalar_lea.hbm %s580_s27, 320  ;;  %s586_s30 = int_to_ptr.vmem [resolvable:$true] %s122_s30 }
  0x15   : > { %p403_p0 = scmp.ne.s32.totalorder %s580_s27, %s402_s4  ;;  %p404_p1 = pneg %p582_p12 }
  0x16   : > { %s407_s7 = scalar_lea.hbm %s680_s0, 1280  ;;  %p408_p4 = scmp.lt.u32.totalorder %s580_s27, %s680_s0 }
  0x17   : > { %p405_p2 = pnand %p404_p1, %p403_p0  ;;  %p409_p5 = scmp.lt.u32.totalorder %s407_s7, %s402_s4 }
  0x18   : > { %p411_p8 = scmp.lt.u32.totalorder %s402_s4, %s580_s27 }
  0x19   : > { %p406_p3 = pneg %p405_p2  ;;  %p410_p7 = por %p409_p5, %p408_p4 }
  0x1b   : > { %p412_p9 = por %p411_p8, %p410_p7 }
  0x1d   : > { %p413_p13 = pnand %p412_p9, %p406_p3 }
  0x1f   : > { %416 = shalt.err (!%p413_p13)
}
  0x20   : > { %s417_s16 = scalar_lea.vmem %s586_s30, 320  ;;  %s500_s17 = smov [#allocation2]  }
  0x21   : > { %p418_p0 = scmp.ne.s32.totalorder %s586_s30, %s417_s16  ;;  %s422_s22 = sshll.u32 %s500_s17, 4  ;;  %s423_s22 = int_to_ptr.vmem [resolvable:$false] %s422_s22 }
  0x22   : > { %s424_s23 = scalar_lea.vmem %s423_s22, 640  ;;  %p425_p10 = scmp.lt.s32.totalorder %s586_s30, %s423_s22 }
  0x23   : > { %p420_p2 = pnand %p418_p0, %p404_p1  ;;  %p426_p4 = scmp.lt.s32.totalorder %s424_s23, %s417_s16 }
  0x25   : > { %p421_p11 = pneg %p420_p2  ;;  %p427_p5 = por %p426_p4, %p425_p10 }
  0x27   : > { %p428_p7 = pnand %p427_p5, %p421_p11 }
  0x29   : > { %431 = shalt.err (!%p428_p7)
}
  0x2a   : > { %s501_s24 = smov 256   ;;  %s502_s25 = smov 64  }
  0x2b   : > { %s503_s26 = smov 4   ;;  %p130_p13 = scmp.lt.s32.totalorder %s498_s12, 5 }
  0x2c   : > { %355 = dma.hbm_to_vmem [thread:$0]  (!%p582_p12), %s580_s27, 320, %s586_s30, %s589_s3, %s501_s24, %s502_s25, %s503_s26  }
  0x2d   : > { %p688_p1 = scmp.ge.s32.totalorder %s498_s12, 1 }
  0x2f   : > { %p131_p3 = pnand %p688_p1, %p130_p13 }
  0x30   : > { %s621_s29 = sand.u32 (!%p131_p3), 1, %s490_s10  }
  0x31   : > { %134 = sbr.rel (%p131_p3) target bundleno = 298 (0x12a), region = 28  ;;  %s137_s5 = scalar_lea.sflag (!%p131_p3), [#allocation3], %s621_s29 }
  0x32   : > { %s347_s4 = smul.u32 (!%p131_p3), 20, %s621_s29 }
  0x34   : > { %s140_s6 = scalar_lea.vmem (!%p131_p3), [#allocation2], %s347_s4 }
  0x38   : > { %477 = dma.done.wait (%p561_p6), %s137_s5, 320  }
  0x39   : > { %479 = vsyncadd (%p561_p6), %s137_s5, 4294966976  ;;  %v504_v0 = vmov 0.0   ;;  %vm505_vm0 = vmmov 0   ;;  %v399_v1 = vld [vmem:[%s140_s6] sm:$0xff]   ;;  %v400_v2 = vld [vmem:[%s140_s6 + $0x8] sm:$0xff]   ;;  %vm189_vm1 = vcmask 1041408  }
  0x3a   : > { %336 = vmatprep.subr.bf16.mxu0 %v504_v0  ;;  %342 = vmatprep.mubr.msk.bf16.mxu0 %vm505_vm0, %v504_v0  ;;  %v401_v3 = vld [vmem:[%s140_s6 + $0x10] ss:$0 sps:$4 sm:$0x33]   ;;  %v162_v5 = vld [vmem:[%s681_s1] sm:$0x3]  ;;  %vm185_vm2 = vcmask 293888  }
  0x3b   : > { %337 = vmatpush3.bf16.msra.mxu0 %v399_v1  ;;  %v191_v4 = vsel %vm189_vm1, %v401_v3, 0  ;;  %s323_s19 = sshll.u32 %s621_s29, 2  ;;  %v168_v6 = vld [vmem:[%s140_s6] sm:$0x3]  ;;  %s329_s30 = sshll.u32 %s543_s13, 6 }
  0x3c   : > { %338 = vmatprep.subr.bf16.mxu0 %v504_v0  ;;  %v169_v7 = vunpack.c.l.bf16 %v168_v6  ;;  %s160_s3 = scalar_lea.vmem [#allocation5], %s323_s19  ;;  %s637_s16 = scalar_lea.hbm %s682_s2, %s329_s30 }
  0x3d   : > { %s248_s7 = sshll.u32 %s160_s3, 4  ;;  %s235_s17 = scalar_lea.sflag [#allocation4], %s621_s29  ;;  %s639_s7 = int_to_ptr.vmem [resolvable:$true] %s248_s7 }
  0x3e   : > { %s432_s13 = scalar_lea.vmem %s639_s7, 64  ;;  %p689_p10 = scmp.ne.s32.totalorder %s685_s20, 0 }
  0x3f   : > { %339 = vmatpush3.bf16.msra.mxu0 %v400_v2  ;;  %p433_p6 = scmp.ne.s32.totalorder %s639_s7, %s432_s13  ;;  %s506_s22 = smov [#allocation5]  }
  0x40   : > { %340 = vmatprep.subr.bf16.mxu0 %v504_v0  ;;  %s436_s23 = sshll.u32 %s506_s22, 4  ;;  %s437_s23 = int_to_ptr.vmem [resolvable:$false] %s436_s23 }
  0x41   : > { %p434_p11 = pnand %p433_p6, %p689_p10  ;;  %s438_s24 = scalar_lea.vmem %s437_s23, 128 }
  0x42   : > { %p439_p8 = scmp.lt.s32.totalorder %s639_s7, %s437_s23  ;;  %p440_p9 = scmp.lt.s32.totalorder %s438_s24, %s432_s13 }
  0x43   : > { %341 = vmatpush3.bf16.msra.mxu0 %v191_v4  ;;  %p435_p12 = pneg %p434_p11 }
  0x44   : > { %p441_p0 = por %p440_p9, %p439_p8 }
  0x46   : > { %343 = vmatmul.mubr.msk.bf16.vlgmr.msra.gmra.mrb[0].mxu0 %vm185_vm2, %v162_v5  ;;  %p442_p2 = pnand %p441_p0, %p435_p12 }
 0x119   : > { %v227_v8 = vpop.f32.mrb[0].mxu0 }
 0x11a   : > { %v228_v9 = vadd.f32 %v227_v8, %v169_v7  ;;  %v344_v10 = vpop.f32.mrb[1].mxu0 }
 0x11b   : > { %v230_v11 = vpop.f32.mrb[2].mxu0 }
 0x11c   : > { %233 = vst [vmem:[%s160_s3] sm:$0xf] %v228_v9  ;;  %v345_v12 = vpop.f32.mrb[3].mxu0 }
 0x11d   : > { %445 = shalt.err (!%p442_p2)
}
 0x11e   : > { %s446_s25 = scalar_lea.hbm %s637_s16, 64  ;;  %s450_s4 = scalar_lea.hbm %s682_s2, 256 }
 0x11f   : > { %p447_p4 = scmp.ne.s32.totalorder %s637_s16, %s446_s25  ;;  %p451_p13 = scmp.lt.u32.totalorder %s637_s16, %s682_s2 }
 0x120   : > { %p452_p1 = scmp.lt.u32.totalorder %s450_s4, %s446_s25  ;;  %p454_p6 = scmp.lt.u32.totalorder %s446_s25, %s637_s16 }
 0x121   : > { %p448_p5 = pnand %p447_p4, %p689_p10 }
 0x122   : > { %p453_p3 = por %p452_p1, %p451_p13 }
 0x123   : > { %p449_p7 = pneg %p448_p5 }
 0x124   : > { %p455_p11 = por %p454_p6, %p453_p3 }
 0x126   : > { %p456_p12 = pnand %p455_p11, %p449_p7 }
 0x128   : > { %459 = shalt.err (!%p456_p12)
}
 0x129   : > { %350 = dma.vmem_to_hbm [thread:$0]  (%p689_p10), %s639_s7, 64, %s637_s16, %s235_s17  }
 0x12a PF: > { %p361_p8 = scmp.ge.s32.totalorder %s498_s12, 2  ;;  %s260_s27 = sand.u32 1, %s486_s9  }
 0x12b   : > { %p690_p9 = scmp.ne.s32.totalorder %s686_s21, 0  ;;  %s261_s28 = scalar_lea.sflag [#allocation4], %s260_s27 }
 0x12d   : > { %p357_p0 = pnand %p361_p8, %p690_p9 }
 0x12f   : > { %481 = dma.done.wait (!%p357_p0), %s261_s28, 64  }
 0x130   : > { %483 = vsyncadd (!%p357_p0), %s261_s28, 4294967232  ;;  %p15_p2 = scmp.ge.s32.totalorder %s547_s15, 6   ;;  %s691_s9 = smov %s490_s10 }
 0x131   : > { %s692_s10 = smov %s494_s11  ;;  %s693_s11 = smov %s559_s18 }
 0x132   : > { %s694_s12 = smov %s547_s15  ;;  %17 = sbr.rel (!%p15_p2) target bundleno = 5 (0x5), region = 73 }
 0x139   :  { %266 = vsyncpa [#allocation3], 1 }
 0x13a   :  { %268 = vsyncpa [#allocation3 + $0x1], 1 }
 0x13b   :  { %269 = vsyncpa [#allocation4], 1 }
 0x13c   :  { %271 = vsyncpa [#allocation4 + $0x1], 1 }

</bundles_post_ra>
